<compile_context>
chip_gen: v7x
topology: tpu7x:2x2x1
jax: 0.10.0
libtpu: 0.0.40
codegen_flags: <defaults>
</compile_context>

<pallas_src>
import functools

import jax
import jax.numpy as jnp
from jax import lax
from jax.experimental import pallas as pl
from jax.experimental.pallas import tpu as pltpu


def _round_up(x, m):
    return (x + m - 1) // m * m


def _cdiv(a, b):
    return (a + b - 1) // b


# ---------------------------------------------------------------------------
# Kernel 1: RNN recurrence (time-chunked, input projection hoisted per chunk,
# h carried across chunks in VMEM scratch, xw aliased onto the output block).
# ---------------------------------------------------------------------------
def rnn_recurrence_kernel(xemb_ref, wih_ref, whh_ref, b_ref, hs_ref, h_scr,
                          *, unroll):
    Tc, BB, Ep = xemb_ref.shape           # time-major chunk: (Tc, BB, Ep)
    Hp = whh_ref.shape[1]
    wdt = wih_ref.dtype                   # compute dtype (f32 or bf16)

    # First time-chunk of this batch block: h0 = 0 (PyTorch default).
    @pl.when(pl.program_id(1) == 0)
    def _():
        h_scr[...] = jnp.zeros_like(h_scr)

    # --- Hoisted, time-parallel input projection for this chunk -------------
    # (Tc*BB, Ep) @ (Ep, Hp) + presummed bias; written straight into hs_ref
    # (no extra VMEM scratch -- each xw[t] is consumed exactly once below).
    x2d = xemb_ref[...].reshape(Tc * BB, Ep).astype(wdt)
    xw = jnp.dot(x2d, wih_ref[...], preferred_element_type=jnp.float32) + b_ref[...]
    hs_ref[...] = xw.reshape(Tc, BB, Hp).astype(hs_ref.dtype)

    whh = whh_ref[...]

    # --- Serial part: only (BB, Hp) @ (Hp, Hp) + tanh per step ---------------
    # Recurrent state h stays f32 (only the MXU operand is cast); tanh in f32.
    def step(t, h):
        h_new = jnp.tanh(
            hs_ref[t].astype(jnp.float32)
            + jnp.dot(h.astype(whh.dtype), whh,
                      preferred_element_type=jnp.float32))
        hs_ref[t] = h_new.astype(hs_ref.dtype)   # lane-dense leading-axis store
        return h_new

    h_scr[...] = lax.fori_loop(0, Tc, step, h_scr[...], unroll=unroll)


# ---------------------------------------------------------------------------
# Kernel 2: output projection as a tiled, 128-aligned matmul.
# ---------------------------------------------------------------------------
def proj_kernel(h_ref, w_ref, b_ref, o_ref):
    o_ref[...] = (
        jnp.dot(h_ref[...], w_ref[...], preferred_element_type=jnp.float32)
        + b_ref[...])


# ---------------------------------------------------------------------------
# Wrapper: full LM_RNN forward.
# ---------------------------------------------------------------------------
def lm_rnn_forward(token_ids, params, *, compute_dtype=jnp.float32):
    """token_ids: (B, T) int32. Returns (B, V, T) float32 (matches permute(0,2,1))."""
    emb_table = params["embedding"]                  # (V, E)
    w_ih, w_hh = params["w_ih"], params["w_hh"]      # (E, H), (H, H)
    b_ih, b_hh = params["b_ih"], params["b_hh"]      # (1, H), (1, H)
    w_out, b_out = params["w_out"], params["b_out"]  # (H, V), (1, V)

    B, T = token_ids.shape
    V, E = emb_table.shape
    H = w_hh.shape[0]

    f32 = jnp.float32
    cdt = compute_dtype
    itemsize = jnp.dtype(cdt).itemsize

    # --- Pad everything to the (8, 128) tile; zeros keep results exact -------
    Bp = _round_up(B, 8)
    Ep = _round_up(E, 128)
    Hp = _round_up(H, 128)
    Vp = _round_up(V, 128)

    # Pre-cast weights once in the wrapper (no per-grid-step casts on-chip);
    # biases stay f32 (added into the f32 accumulation).
    emb_p = jnp.zeros((V, Ep), f32).at[:, :E].set(emb_table.astype(f32))
    wih_p = jnp.zeros((Ep, Hp), f32).at[:E, :H].set(w_ih.astype(f32)).astype(cdt)
    whh_p = jnp.zeros((Hp, Hp), f32).at[:H, :H].set(w_hh.astype(f32)).astype(cdt)
    b_p = jnp.zeros((1, Hp), f32).at[:, :H].set((b_ih + b_hh).astype(f32))   # presummed
    wout_p = jnp.zeros((Hp, Vp), f32).at[:H, :V].set(w_out.astype(f32)).astype(cdt)
    bout_p = jnp.zeros((1, Vp), f32).at[:, :V].set(b_out.astype(f32))

    # --- Block sizing ---------------------------------------------------------
    BB = min(128, Bp)                     # up to 128 rows per MXU weight pass
    Bp = _round_up(Bp, BB)
    nB = Bp // BB
    # TODO(synk): on v7x with nB == 1 and Bp >= 16, split BB in half so the
    # 'parallel' batch axis can shard the recurrence across both TensorCores.

    # Time chunk keeps the double-buffered (emb, hs) blocks well inside scoped VMEM.
    per_t_bytes = BB * (Ep * 4 + Hp * itemsize)
    Tc = max(1, min(T, (4 << 20) // per_t_bytes))
    nT = _cdiv(T, Tc)
    Tp = nT * Tc

    # --- Embedding gather (XLA glue), batch/time pad, time-major layout ------
    emb = jnp.take(emb_p, token_ids, axis=0)                  # (B, T, Ep) f32
    emb = jnp.pad(emb, ((0, Bp - B), (0, Tp - T), (0, 0)))    # (Bp, Tp, Ep)
    emb_tb = jnp.transpose(emb, (1, 0, 2))                    # (Tp, Bp, Ep)

    unroll = Tc if Tc <= 32 else 8
    wbytes = (Ep * Hp + Hp * Hp) * itemsize + Hp * 4
    blk_bytes = Tc * per_t_bytes
    rnn_vmem = int(min(max(2 * blk_bytes + 2 * wbytes + BB * Hp * 4 + (2 << 20),
                           32 << 20), 64 << 20))

    hs = pl.pallas_call(
        functools.partial(rnn_recurrence_kernel, unroll=unroll),
        out_shape=jax.ShapeDtypeStruct((Tp, Bp, Hp), cdt),
        grid=(nB, nT),
        in_specs=[
            pl.BlockSpec((Tc, BB, Ep), lambda b, t: (t, b, 0)),
            pl.BlockSpec((Ep, Hp), lambda b, t: (0, 0)),
            pl.BlockSpec((Hp, Hp), lambda b, t: (0, 0)),
            pl.BlockSpec((1, Hp), lambda b, t: (0, 0)),
        ],
        out_specs=pl.BlockSpec((Tc, BB, Hp), lambda b, t: (t, b, 0)),
        scratch_shapes=[pltpu.VMEM((BB, Hp), jnp.float32)],   # h carried across chunks
        compiler_params=pltpu.CompilerParams(
            dimension_semantics=("parallel", "arbitrary"),
            vmem_limit_bytes=rnn_vmem),
    )(emb_tb, wih_p, whh_p, b_p)

    # --- Output projection: large-tile (Tp*Bp, Hp) @ (Hp, Vp) matmul ----------
    M = Tp * Bp
    hs2d = hs.reshape(M, Hp)
    tm = next(c for c in (512, 256, 128, 64, 32, 16, 8) if M % c == 0)
    tn = next(c for c in (512, 256, 128) if Vp % c == 0)
    proj_vmem = int(min(max(2 * ((tm * Hp + Hp * tn) * itemsize
                                 + (tn + tm * tn) * 4) + (2 << 20),
                            32 << 20), 64 << 20))

    logits2d = pl.pallas_call(
        proj_kernel,
        out_shape=jax.ShapeDtypeStruct((M, Vp), f32),
        grid=(M // tm, Vp // tn),
        in_specs=[
            pl.BlockSpec((tm, Hp), lambda i, j: (i, 0)),
            pl.BlockSpec((Hp, tn), lambda i, j: (0, j)),
            pl.BlockSpec((1, tn), lambda i, j: (0, j)),
        ],
        out_specs=pl.BlockSpec((tm, tn), lambda i, j: (i, j)),
        compiler_params=pltpu.CompilerParams(
            dimension_semantics=("parallel", "parallel"),
            vmem_limit_bytes=proj_vmem),
    )(hs2d, wout_p, bout_p)

    # Un-pad and match PyTorch's .permute(0, 2, 1): (B, V, T).
    # TODO(synk): fold this permute into the projection kernel's output layout
    # (emit (B, Vp, Tpad) lane-dense) to remove one extra HBM pass of the logits.
    logits = logits2d.reshape(Tp, Bp, Vp)[:T, :B, :V]          # (T, B, V)
    return jnp.transpose(logits, (1, 2, 0))                    # (B, V, T)


# ---------------------------------------------------------------------------
# Parameter construction + pure-JAX reference (torch semantics).
# ---------------------------------------------------------------------------
def make_params(key, vocab_size, emb_size, hidden_size, pad_index=0):
    keys = jax.random.split(key, 7)
    scale = 0.1
    embedding = scale * jax.random.normal(keys[0], (vocab_size, emb_size), jnp.float32)
    embedding = embedding.at[pad_index].set(0.0)   # padding_idx row is zero
    w_ih = scale * jax.random.normal(keys[1], (emb_size, hidden_size), jnp.float32)
    w_hh = scale * jax.random.normal(keys[2], (hidden_size, hidden_size), jnp.float32)
    b_ih = scale * jax.random.normal(keys[3], (1, hidden_size), jnp.float32)
    b_hh = scale * jax.random.normal(keys[4], (1, hidden_size), jnp.float32)
    w_out = scale * jax.random.normal(keys[5], (hidden_size, vocab_size), jnp.float32)
    b_out = scale * jax.random.normal(keys[6], (1, vocab_size), jnp.float32)
    return dict(embedding=embedding, w_ih=w_ih, w_hh=w_hh, b_ih=b_ih, b_hh=b_hh,
                w_out=w_out, b_out=b_out)


def lm_rnn_reference(token_ids, params):
    emb = jnp.take(params["embedding"], token_ids, axis=0).astype(jnp.float32)
    B, T, E = emb.shape
    H = params["w_hh"].shape[0]

    def step(h, x_t):
        h_new = jnp.tanh(
            jnp.dot(x_t, params["w_ih"], precision="highest") + params["b_ih"]
            + jnp.dot(h, params["w_hh"], precision="highest") + params["b_hh"])
        return h_new, h_new

    h0 = jnp.zeros((B, H), jnp.float32)
    _, hs = lax.scan(step, h0, jnp.transpose(emb, (1, 0, 2)))    # (T, B, H)
    rnn_out = jnp.transpose(hs, (1, 0, 2))                       # (B, T, H)
    logits = jnp.dot(rnn_out, params["w_out"], precision="highest") + params["b_out"]
    return jnp.transpose(logits, (0, 2, 1))                      # (B, V, T)


if __name__ == "__main__":
    B, T = 2, 8
    emb_size, hidden_size, output_size = 32, 32, 64
    pad_index = 0

    key = jax.random.PRNGKey(0)
    k_tok, k_par = jax.random.split(key)
    params = make_params(k_par, output_size, emb_size, hidden_size, pad_index)
    token_ids = jax.random.randint(k_tok, (B, T), 0, output_size, dtype=jnp.int32)

    ref = jax.block_until_ready(lm_rnn_reference(token_ids, params))

    # f32 path: near-exact match against the reference.
    out_f32 = jax.block_until_ready(
        lm_rnn_forward(token_ids, params, compute_dtype=jnp.float32))
    assert out_f32.shape == (B, output_size, T)
    assert jnp.allclose(out_f32, ref, atol=1e-3, rtol=1e-3), "f32 mismatch vs reference"

    # bf16 path: MXU-rate matmuls (f32 accumulation, f32 recurrent state / tanh).
    out_bf16 = jax.block_until_ready(
        lm_rnn_forward(token_ids, params, compute_dtype=jnp.bfloat16))
    assert out_bf16.shape == (B, output_size, T)
    assert jnp.allclose(out_bf16, ref, atol=3e-2, rtol=3e-2), "bf16 mismatch vs reference"

    print("KERNEL_OK")
</pallas_src>

<mosaic_0001>
module attributes {stable_mosaic.version = 11 : i64} {
  func.func @rnn_recurrence_kernel(%arg0: i32, %arg1: i32, %arg2: memref<8x8x128xf32, #tpu.memory_space<vmem>>, %arg3: memref<128x128xf32, #tpu.memory_space<vmem>>, %arg4: memref<128x128xf32, #tpu.memory_space<vmem>>, %arg5: memref<1x128xf32, #tpu.memory_space<vmem>>, %arg6: memref<8x8x128xf32, #tpu.memory_space<vmem>>, %arg7: memref<8x128xf32, #tpu.memory_space<vmem>>) attributes {dimension_semantics = [#tpu.dimension_semantics<parallel>, #tpu.dimension_semantics<arbitrary>], iteration_bounds = array<i64: 1, 1>, scalar_prefetch = 0 : i64, scratch_operands = 1 : i64, tpu.core_type = #tpu.core_type<tc>, window_params = [{transform_indices = @transform_0, window_bounds = array<i64: 8, 8, 128>}, {pipeline_mode = #tpu.pipeline_mode<synchronous>, transform_indices = @transform_1, window_bounds = array<i64: 128, 128>}, {pipeline_mode = #tpu.pipeline_mode<synchronous>, transform_indices = @transform_2, window_bounds = array<i64: 128, 128>}, {pipeline_mode = #tpu.pipeline_mode<synchronous>, transform_indices = @transform_3, window_bounds = array<i64: 1, 128>}, {transform_indices = @transform_4, window_bounds = array<i64: 8, 8, 128>}]} {
    %c0_i32 = arith.constant 0 : i32
    %0 = arith.cmpi eq, %arg1, %c0_i32 : i32
    %1 = arith.extui %0 : i1 to i32
    %c0_i32_0 = arith.constant 0 : i32
    %2 = arith.cmpi ne, %1, %c0_i32_0 : i32
    scf.if %2 {
      %cst_57 = arith.constant 0.000000e+00 : f32
      %95 = vector.broadcast %cst_57 : f32 to vector<8x128xf32>
      %c0_58 = arith.constant 0 : index
      %c0_59 = arith.constant 0 : index
      %96 = vector.load %arg7[%c0_58, %c0_59] : memref<8x128xf32, #tpu.memory_space<vmem>>, vector<8x128xf32>
      tpu.vector_store %arg7[%c0_58, %c0_59], %95 {strides = array<i32>} : memref<8x128xf32, #tpu.memory_space<vmem>>, vector<8x128xf32>,
    } else {
    }
    %c0 = arith.constant 0 : index
    %c0_1 = arith.constant 0 : index
    %c0_2 = arith.constant 0 : index
    %3 = vector.load %arg2[%c0, %c0_1, %c0_2] : memref<8x8x128xf32, #tpu.memory_space<vmem>>, vector<8x8x128xf32>
    %4 = vector.shape_cast %3 : vector<8x8x128xf32> to vector<64x128xf32>
    %c0_3 = arith.constant 0 : index
    %c0_4 = arith.constant 0 : index
    %5 = vector.load %arg3[%c0_3, %c0_4] : memref<128x128xf32, #tpu.memory_space<vmem>>, vector<128x128xf32>
    %cst = arith.constant dense<0.000000e+00> : vector<64x128xf32>
    %6 = tpu.matmul %4, %5, %cst {dimension_numbers = #tpu.dot_dimension_numbers<[1], [0], [0], [1], [0, 0, 1, 1], [], []>} : vector<64x128xf32>, vector<128x128xf32>, vector<64x128xf32> -> vector<64x128xf32>
    %c0_5 = arith.constant 0 : index
    %c0_6 = arith.constant 0 : index
    %7 = vector.load %arg5[%c0_5, %c0_6] : memref<1x128xf32, #tpu.memory_space<vmem>>, vector<1x128xf32>
    %8 = vector.broadcast %7 : vector<1x128xf32> to vector<64x128xf32>
    %9 = arith.addf %6, %8 : vector<64x128xf32>
    %10 = vector.shape_cast %9 : vector<64x128xf32> to vector<8x8x128xf32>
    %c0_7 = arith.constant 0 : index
    %c0_8 = arith.constant 0 : index
    %c0_9 = arith.constant 0 : index
    %11 = vector.load %arg6[%c0_7, %c0_8, %c0_9] : memref<8x8x128xf32, #tpu.memory_space<vmem>>, vector<8x8x128xf32>
    tpu.vector_store %arg6[%c0_7, %c0_8, %c0_9], %10 {strides = array<i32>} : memref<8x8x128xf32, #tpu.memory_space<vmem>>, vector<8x8x128xf32>,
    %c0_10 = arith.constant 0 : index
    %c0_11 = arith.constant 0 : index
    %12 = vector.load %arg4[%c0_10, %c0_11] : memref<128x128xf32, #tpu.memory_space<vmem>>, vector<128x128xf32>
    %c0_12 = arith.constant 0 : index
    %c0_13 = arith.constant 0 : index
    %13 = vector.load %arg7[%c0_12, %c0_13] : memref<8x128xf32, #tpu.memory_space<vmem>>, vector<8x128xf32>
    %c0_i32_14 = arith.constant 0 : i32
    %14 = arith.index_cast %c0_i32_14 : i32 to index
    %c0_15 = arith.constant 0 : index
    %c0_16 = arith.constant 0 : index
    %15 = vector.load %arg6[%14, %c0_15, %c0_16] : memref<8x8x128xf32, #tpu.memory_space<vmem>>, vector<1x8x128xf32>
    %16 = vector.shape_cast %15 : vector<1x8x128xf32> to vector<8x128xf32>
    %cst_17 = arith.constant dense<0.000000e+00> : vector<8x128xf32>
    %17 = tpu.matmul %13, %12, %cst_17 {dimension_numbers = #tpu.dot_dimension_numbers<[1], [0], [0], [1], [0, 0, 1, 1], [], []>} : vector<8x128xf32>, vector<128x128xf32>, vector<8x128xf32> -> vector<8x128xf32>
    %18 = arith.addf %16, %17 : vector<8x128xf32>
    %19 = math.tanh %18 : vector<8x128xf32>
    %20 = arith.index_cast %c0_i32_14 : i32 to index
    %c0_18 = arith.constant 0 : index
    %c0_19 = arith.constant 0 : index
    %21 = vector.load %arg6[%20, %c0_18, %c0_19] : memref<8x8x128xf32, #tpu.memory_space<vmem>>, vector<1x8x128xf32>
    %22 = vector.shape_cast %21 : vector<1x8x128xf32> to vector<8x128xf32>
    %23 = vector.shape_cast %19 : vector<8x128xf32> to vector<1x8x128xf32>
    tpu.vector_store %arg6[%20, %c0_18, %c0_19], %23 {strides = array<i32>} : memref<8x8x128xf32, #tpu.memory_space<vmem>>, vector<1x8x128xf32>,
    %c1_i32 = arith.constant 1 : i32
    %24 = arith.index_cast %c1_i32 : i32 to index
    %c0_20 = arith.constant 0 : index
    %c0_21 = arith.constant 0 : index
    %25 = vector.load %arg6[%24, %c0_20, %c0_21] : memref<8x8x128xf32, #tpu.memory_space<vmem>>, vector<1x8x128xf32>
    %26 = vector.shape_cast %25 : vector<1x8x128xf32> to vector<8x128xf32>
    %cst_22 = arith.constant dense<0.000000e+00> : vector<8x128xf32>
    %27 = tpu.matmul %19, %12, %cst_22 {dimension_numbers = #tpu.dot_dimension_numbers<[1], [0], [0], [1], [0, 0, 1, 1], [], []>} : vector<8x128xf32>, vector<128x128xf32>, vector<8x128xf32> -> vector<8x128xf32>
    %28 = arith.addf %26, %27 : vector<8x128xf32>
    %29 = math.tanh %28 : vector<8x128xf32>
    %30 = arith.index_cast %c1_i32 : i32 to index
    %c0_23 = arith.constant 0 : index
    %c0_24 = arith.constant 0 : index
    %31 = vector.load %arg6[%30, %c0_23, %c0_24] : memref<8x8x128xf32, #tpu.memory_space<vmem>>, vector<1x8x128xf32>
    %32 = vector.shape_cast %31 : vector<1x8x128xf32> to vector<8x128xf32>
    %33 = vector.shape_cast %29 : vector<8x128xf32> to vector<1x8x128xf32>
    tpu.vector_store %arg6[%30, %c0_23, %c0_24], %33 {strides = array<i32>} : memref<8x8x128xf32, #tpu.memory_space<vmem>>, vector<1x8x128xf32>,
    %c2_i32 = arith.constant 2 : i32
    %34 = arith.index_cast %c2_i32 : i32 to index
    %c0_25 = arith.constant 0 : index
    %c0_26 = arith.constant 0 : index
    %35 = vector.load %arg6[%34, %c0_25, %c0_26] : memref<8x8x128xf32, #tpu.memory_space<vmem>>, vector<1x8x128xf32>
    %36 = vector.shape_cast %35 : vector<1x8x128xf32> to vector<8x128xf32>
    %cst_27 = arith.constant dense<0.000000e+00> : vector<8x128xf32>
    %37 = tpu.matmul %29, %12, %cst_27 {dimension_numbers = #tpu.dot_dimension_numbers<[1], [0], [0], [1], [0, 0, 1, 1], [], []>} : vector<8x128xf32>, vector<128x128xf32>, vector<8x128xf32> -> vector<8x128xf32>
    %38 = arith.addf %36, %37 : vector<8x128xf32>
    %39 = math.tanh %38 : vector<8x128xf32>
    %40 = arith.index_cast %c2_i32 : i32 to index
    %c0_28 = arith.constant 0 : index
    %c0_29 = arith.constant 0 : index
    %41 = vector.load %arg6[%40, %c0_28, %c0_29] : memref<8x8x128xf32, #tpu.memory_space<vmem>>, vector<1x8x128xf32>
    %42 = vector.shape_cast %41 : vector<1x8x128xf32> to vector<8x128xf32>
    %43 = vector.shape_cast %39 : vector<8x128xf32> to vector<1x8x128xf32>
    tpu.vector_store %arg6[%40, %c0_28, %c0_29], %43 {strides = array<i32>} : memref<8x8x128xf32, #tpu.memory_space<vmem>>, vector<1x8x128xf32>,
    %c3_i32 = arith.constant 3 : i32
    %44 = arith.index_cast %c3_i32 : i32 to index
    %c0_30 = arith.constant 0 : index
    %c0_31 = arith.constant 0 : index
    %45 = vector.load %arg6[%44, %c0_30, %c0_31] : memref<8x8x128xf32, #tpu.memory_space<vmem>>, vector<1x8x128xf32>
    %46 = vector.shape_cast %45 : vector<1x8x128xf32> to vector<8x128xf32>
    %cst_32 = arith.constant dense<0.000000e+00> : vector<8x128xf32>
    %47 = tpu.matmul %39, %12, %cst_32 {dimension_numbers = #tpu.dot_dimension_numbers<[1], [0], [0], [1], [0, 0, 1, 1], [], []>} : vector<8x128xf32>, vector<128x128xf32>, vector<8x128xf32> -> vector<8x128xf32>
    %48 = arith.addf %46, %47 : vector<8x128xf32>
    %49 = math.tanh %48 : vector<8x128xf32>
    %50 = arith.index_cast %c3_i32 : i32 to index
    %c0_33 = arith.constant 0 : index
    %c0_34 = arith.constant 0 : index
    %51 = vector.load %arg6[%50, %c0_33, %c0_34] : memref<8x8x128xf32, #tpu.memory_space<vmem>>, vector<1x8x128xf32>
    %52 = vector.shape_cast %51 : vector<1x8x128xf32> to vector<8x128xf32>
    %53 = vector.shape_cast %49 : vector<8x128xf32> to vector<1x8x128xf32>
    tpu.vector_store %arg6[%50, %c0_33, %c0_34], %53 {strides = array<i32>} : memref<8x8x128xf32, #tpu.memory_space<vmem>>, vector<1x8x128xf32>,
    %c4_i32 = arith.constant 4 : i32
    %54 = arith.index_cast %c4_i32 : i32 to index
    %c0_35 = arith.constant 0 : index
    %c0_36 = arith.constant 0 : index
    %55 = vector.load %arg6[%54, %c0_35, %c0_36] : memref<8x8x128xf32, #tpu.memory_space<vmem>>, vector<1x8x128xf32>
    %56 = vector.shape_cast %55 : vector<1x8x128xf32> to vector<8x128xf32>
    %cst_37 = arith.constant dense<0.000000e+00> : vector<8x128xf32>
    %57 = tpu.matmul %49, %12, %cst_37 {dimension_numbers = #tpu.dot_dimension_numbers<[1], [0], [0], [1], [0, 0, 1, 1], [], []>} : vector<8x128xf32>, vector<128x128xf32>, vector<8x128xf32> -> vector<8x128xf32>
    %58 = arith.addf %56, %57 : vector<8x128xf32>
    %59 = math.tanh %58 : vector<8x128xf32>
    %60 = arith.index_cast %c4_i32 : i32 to index
    %c0_38 = arith.constant 0 : index
    %c0_39 = arith.constant 0 : index
    %61 = vector.load %arg6[%60, %c0_38, %c0_39] : memref<8x8x128xf32, #tpu.memory_space<vmem>>, vector<1x8x128xf32>
    %62 = vector.shape_cast %61 : vector<1x8x128xf32> to vector<8x128xf32>
    %63 = vector.shape_cast %59 : vector<8x128xf32> to vector<1x8x128xf32>
    tpu.vector_store %arg6[%60, %c0_38, %c0_39], %63 {strides = array<i32>} : memref<8x8x128xf32, #tpu.memory_space<vmem>>, vector<1x8x128xf32>,
    %c5_i32 = arith.constant 5 : i32
    %64 = arith.index_cast %c5_i32 : i32 to index
    %c0_40 = arith.constant 0 : index
    %c0_41 = arith.constant 0 : index
    %65 = vector.load %arg6[%64, %c0_40, %c0_41] : memref<8x8x128xf32, #tpu.memory_space<vmem>>, vector<1x8x128xf32>
    %66 = vector.shape_cast %65 : vector<1x8x128xf32> to vector<8x128xf32>
    %cst_42 = arith.constant dense<0.000000e+00> : vector<8x128xf32>
    %67 = tpu.matmul %59, %12, %cst_42 {dimension_numbers = #tpu.dot_dimension_numbers<[1], [0], [0], [1], [0, 0, 1, 1], [], []>} : vector<8x128xf32>, vector<128x128xf32>, vector<8x128xf32> -> vector<8x128xf32>
    %68 = arith.addf %66, %67 : vector<8x128xf32>
    %69 = math.tanh %68 : vector<8x128xf32>
    %70 = arith.index_cast %c5_i32 : i32 to index
    %c0_43 = arith.constant 0 : index
    %c0_44 = arith.constant 0 : index
    %71 = vector.load %arg6[%70, %c0_43, %c0_44] : memref<8x8x128xf32, #tpu.memory_space<vmem>>, vector<1x8x128xf32>
    %72 = vector.shape_cast %71 : vector<1x8x128xf32> to vector<8x128xf32>
    %73 = vector.shape_cast %69 : vector<8x128xf32> to vector<1x8x128xf32>
    tpu.vector_store %arg6[%70, %c0_43, %c0_44], %73 {strides = array<i32>} : memref<8x8x128xf32, #tpu.memory_space<vmem>>, vector<1x8x128xf32>,
    %c6_i32 = arith.constant 6 : i32
    %74 = arith.index_cast %c6_i32 : i32 to index
    %c0_45 = arith.constant 0 : index
    %c0_46 = arith.constant 0 : index
    %75 = vector.load %arg6[%74, %c0_45, %c0_46] : memref<8x8x128xf32, #tpu.memory_space<vmem>>, vector<1x8x128xf32>
    %76 = vector.shape_cast %75 : vector<1x8x128xf32> to vector<8x128xf32>
    %cst_47 = arith.constant dense<0.000000e+00> : vector<8x128xf32>
    %77 = tpu.matmul %69, %12, %cst_47 {dimension_numbers = #tpu.dot_dimension_numbers<[1], [0], [0], [1], [0, 0, 1, 1], [], []>} : vector<8x128xf32>, vector<128x128xf32>, vector<8x128xf32> -> vector<8x128xf32>
    %78 = arith.addf %76, %77 : vector<8x128xf32>
    %79 = math.tanh %78 : vector<8x128xf32>
    %80 = arith.index_cast %c6_i32 : i32 to index
    %c0_48 = arith.constant 0 : index
    %c0_49 = arith.constant 0 : index
    %81 = vector.load %arg6[%80, %c0_48, %c0_49] : memref<8x8x128xf32, #tpu.memory_space<vmem>>, vector<1x8x128xf32>
    %82 = vector.shape_cast %81 : vector<1x8x128xf32> to vector<8x128xf32>
    %83 = vector.shape_cast %79 : vector<8x128xf32> to vector<1x8x128xf32>
    tpu.vector_store %arg6[%80, %c0_48, %c0_49], %83 {strides = array<i32>} : memref<8x8x128xf32, #tpu.memory_space<vmem>>, vector<1x8x128xf32>,
    %c7_i32 = arith.constant 7 : i32
    %84 = arith.index_cast %c7_i32 : i32 to index
    %c0_50 = arith.constant 0 : index
    %c0_51 = arith.constant 0 : index
    %85 = vector.load %arg6[%84, %c0_50, %c0_51] : memref<8x8x128xf32, #tpu.memory_space<vmem>>, vector<1x8x128xf32>
    %86 = vector.shape_cast %85 : vector<1x8x128xf32> to vector<8x128xf32>
    %cst_52 = arith.constant dense<0.000000e+00> : vector<8x128xf32>
    %87 = tpu.matmul %79, %12, %cst_52 {dimension_numbers = #tpu.dot_dimension_numbers<[1], [0], [0], [1], [0, 0, 1, 1], [], []>} : vector<8x128xf32>, vector<128x128xf32>, vector<8x128xf32> -> vector<8x128xf32>
    %88 = arith.addf %86, %87 : vector<8x128xf32>
    %89 = math.tanh %88 : vector<8x128xf32>
    %90 = arith.index_cast %c7_i32 : i32 to index
    %c0_53 = arith.constant 0 : index
    %c0_54 = arith.constant 0 : index
    %91 = vector.load %arg6[%90, %c0_53, %c0_54] : memref<8x8x128xf32, #tpu.memory_space<vmem>>, vector<1x8x128xf32>
    %92 = vector.shape_cast %91 : vector<1x8x128xf32> to vector<8x128xf32>
    %93 = vector.shape_cast %89 : vector<8x128xf32> to vector<1x8x128xf32>
    tpu.vector_store %arg6[%90, %c0_53, %c0_54], %93 {strides = array<i32>} : memref<8x8x128xf32, #tpu.memory_space<vmem>>, vector<1x8x128xf32>,
    %c8_i32 = arith.constant 8 : i32
    %c0_55 = arith.constant 0 : index
    %c0_56 = arith.constant 0 : index
    %94 = vector.load %arg7[%c0_55, %c0_56] : memref<8x128xf32, #tpu.memory_space<vmem>>, vector<8x128xf32>
    tpu.vector_store %arg7[%c0_55, %c0_56], %89 {strides = array<i32>} : memref<8x128xf32, #tpu.memory_space<vmem>>, vector<8x128xf32>,
    return
  }
  func.func @transform_0(%arg0: i32, %arg1: i32) -> (i32, i32, i32) {
    %c0_i32 = arith.constant 0 : i32
    %c0_i32_0 = arith.constant 0 : i32
    return %arg1, %arg0, %c0_i32 : i32, i32, i32
  }
  func.func @transform_1(%arg0: i32, %arg1: i32) -> (i32, i32) {
    %c0_i32 = arith.constant 0 : i32
    %c0_i32_0 = arith.constant 0 : i32
    %c0_i32_1 = arith.constant 0 : i32
    return %c0_i32, %c0_i32_0 : i32, i32
  }
  func.func @transform_2(%arg0: i32, %arg1: i32) -> (i32, i32) {
    %c0_i32 = arith.constant 0 : i32
    %c0_i32_0 = arith.constant 0 : i32
    %c0_i32_1 = arith.constant 0 : i32
    return %c0_i32, %c0_i32_0 : i32, i32
  }
  func.func @transform_3(%arg0: i32, %arg1: i32) -> (i32, i32) {
    %c0_i32 = arith.constant 0 : i32
    %c0_i32_0 = arith.constant 0 : i32
    %c0_i32_1 = arith.constant 0 : i32
    return %c0_i32, %c0_i32_0 : i32, i32
  }
  func.func @transform_4(%arg0: i32, %arg1: i32) -> (i32, i32, i32) {
    %c0_i32 = arith.constant 0 : i32
    %c0_i32_0 = arith.constant 0 : i32
    return %arg1, %arg0, %c0_i32 : i32, i32, i32
  }
}

</mosaic_0001>

<bundles_post_ra>
// kernel: tpu_custom_call.1
= control target key start
LH: loop header
LB: loop body
LE: loop exit
PB: predicated region body
PF: predicated region fallthrough
CT: control target
= control target key end

     0   :  { %9 = vsyncpa [#allocation4], 0  ;;  %s1958_s0 = inlined_call_operand.hbm [shape: f32[8,8,128], index: 0, kind: input, shape index: {}]   ;;  %s1959_s1 = inlined_call_operand.hbm [shape: f32[128,128], index: 1, kind: input, shape index: {}]   ;;  %s1960_s2 = inlined_call_operand.hbm [shape: f32[128,128], index: 2, kind: input, shape index: {}]   ;;  %s1961_s3 = inlined_call_operand.vmem [shape: f32[1,128], index: 3, kind: input, shape index: {}]   ;;  %s1962_s4 = inlined_call_operand.hbm [shape: f32[8,8,128], index: 4, kind: output, shape index: {}]  }
   0x1   :  { %10 = vsyncpa [#allocation7], 0 }
   0x2   :  { %11 = vsyncpa [#allocation5], 0  ;;  %s1671_s15 = smov [#allocation6]   ;;  %s1672_s17 = smov [#allocation3]  }
   0x3   :  { %s29_s16 = sshll.u32 %s1671_s15, 4  ;;  %s17_s18 = sshll.u32 %s1672_s17, 4  ;;  %s30_s16 = int_to_ptr.vmem [resolvable:$true] %s29_s16  ;;  %s1705_s18 = int_to_ptr.vmem [resolvable:$true] %s17_s18 }
   0x4   :  { %s1577_s21 = scalar_lea.hbm %s1959_s1, 2048 }
   0x5   :  { %p1578_p0 = scmp.ne.s32.totalorder %s1959_s1, %s1577_s21  ;;  %p1581_p1 = scmp.lt.u32.totalorder %s1577_s21, %s1959_s1 }
   0x7   :  { %p1583_p2 = pnand %p1581_p1, %p1578_p0 }
   0x9   :  { %1586 = shalt.err (!%p1583_p2)
}
   0xa   :  { %s1587_s26 = scalar_lea.vmem %s30_s16, 2048  ;;  %p1592_p4 = scmp.lt.s32.totalorder %s30_s16, %s30_s16 }
   0xb   :  { %p1588_p3 = scmp.ne.s32.totalorder %s30_s16, %s1587_s26  ;;  %p1593_p5 = scmp.lt.s32.totalorder %s1587_s26, %s1587_s26 }
   0xd   :  { %p1594_p6 = por %p1593_p5, %p1592_p4 }
   0xf   :  { %p1595_p7 = pnand %p1594_p6, %p1588_p3 }
  0x11   :  { %1598 = shalt.err (!%p1595_p7)
}
  0x12   :  { %s1673_s27 = smov 128   ;;  %s1674_s28 = smov 8  }
  0x13   :  { %35 = dma.hbm_to_vmem [thread:$0]  %s1959_s1, 2048, %s30_s16, [#allocation7], %s1673_s27, %s1673_s27, %s1674_s28  }
  0x14   :  { %s1599_s7 = scalar_lea.hbm %s1958_s0, 1024 }
  0x15   :  { %p1600_p8 = scmp.ne.s32.totalorder %s1958_s0, %s1599_s7  ;;  %p1603_p9 = scmp.lt.u32.totalorder %s1599_s7, %s1958_s0 }
  0x17   :  { %p1605_p10 = pnand %p1603_p9, %p1600_p8 }
  0x19   :  { %1608 = shalt.err (!%p1605_p10)
}
  0x1a   :  { %s1609_s12 = scalar_lea.vmem %s1705_s18, 1024  ;;  %p1614_p12 = scmp.lt.s32.totalorder %s1705_s18, %s1705_s18 }
  0x1b   :  { %p1610_p11 = scmp.ne.s32.totalorder %s1705_s18, %s1609_s12  ;;  %p1615_p13 = scmp.lt.s32.totalorder %s1609_s12, %s1609_s12 }
  0x1d   :  { %p1616_p0 = por %p1615_p13, %p1614_p12 }
  0x1f   :  { %p1617_p1 = pnand %p1616_p0, %p1610_p11 }
  0x21   :  { %1620 = shalt.err (!%p1617_p1)
}
  0x22   :  { %23 = dma.hbm_to_vmem [thread:$0]  %s1958_s0, 1024, %s1705_s18, [#allocation4], %s1673_s27, %s1673_s27, %s1674_s28  }
  0x23   :  { %s1675_s14 = smov [#allocation8]   ;;  %s1621_s19 = scalar_lea.hbm %s1960_s2, 2048 }
  0x24   :  { %s41_s15 = sshll.u32 %s1675_s14, 4  ;;  %p1622_p2 = scmp.ne.s32.totalorder %s1960_s2, %s1621_s19  ;;  %s42_s15 = int_to_ptr.vmem [resolvable:$true] %s41_s15 }
  0x25   :  { %p1625_p3 = scmp.lt.u32.totalorder %s1621_s19, %s1960_s2 }
  0x27   :  { %p1627_p4 = pnand %p1625_p3, %p1622_p2 }
  0x29   :  { %1630 = shalt.err (!%p1627_p4)
}
  0x2a   :  { %s1631_s24 = scalar_lea.vmem %s42_s15, 2048  ;;  %p1636_p6 = scmp.lt.s32.totalorder %s42_s15, %s42_s15 }
  0x2b   :  { %p1632_p5 = scmp.ne.s32.totalorder %s42_s15, %s1631_s24  ;;  %p1637_p7 = scmp.lt.s32.totalorder %s1631_s24, %s1631_s24 }
  0x2d   :  { %p1638_p8 = por %p1637_p7, %p1636_p6 }
  0x2f   :  { %p1639_p9 = pnand %p1638_p8, %p1632_p5 }
  0x31   :  { %1642 = shalt.err (!%p1639_p9)
}
  0x32   :  { %47 = dma.hbm_to_vmem [thread:$0]  %s1960_s2, 2048, %s42_s15, [#allocation7], %s1673_s27, %s1673_s27, %s1674_s28  }
  0x33   :  { %1665 = dma.done.wait [#allocation4], 1024  }
  0x34   :  { %1666 = vsyncadd [#allocation4], 4294966272 }
  0x35   :  { %1667 = dma.done.wait [#allocation7], 4096  }
  0x36   :  { %1668 = vsyncadd [#allocation7], 4294963200  ;;  %v1676_v0 = vmov 0.0|0.0   ;;  %vm1677_vm0 = vmmov 0   ;;  %v1678_v1 = vmov 0.0   ;;  %v72_v2 = vld [vmem:[#allocation6] sm:$0xff] }
  0x37   :  { %1360 = vmatprep.subr.bf16.mxu1 %v1676_v0  ;;  %1080 = vmatprep.mubr.msk.f32.mxu1 %vm1677_vm0, %v1678_v1  ;;  %v73_v3 = vld [vmem:[#allocation6 + $0x8] sm:$0xff]  ;;  %v74_v4 = vld [vmem:[#allocation6 + $0x10] sm:$0xff]  ;;  %v75_v6 = vld [vmem:[#allocation6 + $0x18] sm:$0xff] }
  0x38   :  { %v1328_v5 = vpack.c.bf16 %v73_v3, %v72_v2  ;;  %v76_v7 = vld [vmem:[#allocation6 + $0x20] sm:$0xff]  ;;  %v1332_v8 = vpack.c.bf16 %v75_v6, %v74_v4  ;;  %v77_v9 = vld [vmem:[#allocation6 + $0x28] sm:$0xff]  ;;  %v210_v13 = vld [vmem:[#allocation8 + $0x10] sm:$0xff] }
  0x39   :  { %v208_v10 = vld [vmem:[#allocation8] sm:$0xff]  ;;  %v209_v11 = vld [vmem:[#allocation8 + $0x8] sm:$0xff]  ;;  %v211_v14 = vld [vmem:[#allocation8 + $0x18] sm:$0xff]  ;;  %v1336_v15 = vpack.c.bf16 %v77_v9, %v76_v7 }
  0x3a   :  { %1329 = vmatprep.subr.bf16.mxu0 %v1328_v5  ;;  %v1760_v12 = vpack.c.bf16 %v209_v11, %v208_v10  ;;  %v78_v16 = vld [vmem:[#allocation6 + $0x30] sm:$0xff]  ;;  %v1763_v17 = vpack.c.bf16 %v211_v14, %v210_v13  ;;  %v79_v18 = vld [vmem:[#allocation6 + $0x38] sm:$0xff]  ;;  %v212_v19 = vld [vmem:[#allocation8 + $0x20] sm:$0xff] }
  0x3b   :  { %1331 = vmatpush3.bf16.msra.mxu0 %v1328_v5  ;;  %v213_v20 = vld [vmem:[#allocation8 + $0x28] sm:$0xff]  ;;  %v64_v21 = vld [vmem:[#allocation3] sm:$0xff]  ;;  %v1340_v22 = vpack.c.bf16 %v79_v18, %v78_v16  ;;  %v214_v26 = vld [vmem:[#allocation8 + $0x30] sm:$0xff] }
  0x3c   :  { %1333 = vmatprep.subr.bf16.mxu0 %v1332_v8  ;;  %1362 = vmatpush3.bf16.msra.mxu1 %v1760_v12  ;;  %v80_v23 = vld [vmem:[#allocation6 + $0x40] sm:$0xff]  ;;  %v1767_v24 = vpack.c.bf16 %v213_v20, %v212_v19  ;;  %v81_v25 = vld [vmem:[#allocation6 + $0x48] sm:$0xff]  ;;  %v215_v27 = vld [vmem:[#allocation8 + $0x38] sm:$0xff] }
  0x3d   :  { %1363 = vmatprep.subr.bf16.mxu1 %v1676_v0  ;;  %1036 = vmatprep.mubr.f32.mxu0 %v64_v21  ;;  %v1344_v28 = vpack.c.bf16 %v81_v25, %v80_v23  ;;  %v82_v29 = vld [vmem:[#allocation6 + $0x50] sm:$0xff]  ;;  %v1771_v30 = vpack.c.bf16 %v215_v27, %v214_v26  ;;  %v83_v31 = vld [vmem:[#allocation6 + $0x58] sm:$0xff]  ;;  %v216_v32 = vld [vmem:[#allocation8 + $0x40] sm:$0xff] }
  0x3e   :  { %v217_v33 = vld [vmem:[#allocation8 + $0x48] sm:$0xff]  ;;  %v1348_v34 = vpack.c.bf16 %v83_v31, %v82_v29  ;;  %v84_v35 = vld [vmem:[#allocation6 + $0x60] sm:$0xff]  ;;  %v218_v38 = vld [vmem:[#allocation8 + $0x50] sm:$0xff] }
  0x3f   :  { %1335 = vmatpush3.bf16.msra.mxu0 %v1332_v8  ;;  %v1775_v36 = vpack.c.bf16 %v217_v33, %v216_v32  ;;  %v85_v37 = vld [vmem:[#allocation6 + $0x68] sm:$0xff]  ;;  %v219_v39 = vld [vmem:[#allocation8 + $0x58] sm:$0xff]  ;;  %v86_v41 = vld [vmem:[#allocation6 + $0x70] sm:$0xff] }
  0x40   :  { %1337 = vmatprep.subr.bf16.mxu0 %v1336_v15  ;;  %1365 = vmatpush3.bf16.msra.mxu1 %v1763_v17  ;;  %v1352_v40 = vpack.c.bf16 %v85_v37, %v84_v35  ;;  %v1779_v42 = vpack.c.bf16 %v219_v39, %v218_v38  ;;  %v87_v43 = vld [vmem:[#allocation6 + $0x78] sm:$0xff]  ;;  %v220_v44 = vld [vmem:[#allocation8 + $0x60] sm:$0xff]  ;;  %v221_v45 = vld [vmem:[#allocation8 + $0x68] sm:$0xff] }
  0x41   :  { %1366 = vmatprep.subr.bf16.mxu1 %v1676_v0  ;;  %v1356_v46 = vpack.c.bf16 %v87_v43, %v86_v41  ;;  %v1783_v47 = vpack.c.bf16 %v221_v45, %v220_v44  ;;  %v222_v48 = vld [vmem:[#allocation8 + $0x70] sm:$0xff]  ;;  %v223_v49 = vld [vmem:[#allocation8 + $0x78] sm:$0xff]  ;;  %v65_v51 = vld [vmem:[#allocation3 + $0x8] sm:$0xff] }
  0x42   :  { %v1787_v50 = vpack.c.bf16 %v223_v49, %v222_v48  ;;  %v66_v52 = vld [vmem:[#allocation3 + $0x10] sm:$0xff]  ;;  %v67_v53 = vld [vmem:[#allocation3 + $0x18] sm:$0xff]  ;;  %v68_v54 = vld [vmem:[#allocation3 + $0x20] sm:$0xff] }
  0x43   :  { %1339 = vmatpush3.bf16.msra.mxu0 %v1336_v15  ;;  %v69_v55 = vld [vmem:[#allocation3 + $0x28] sm:$0xff]  ;;  %v70_v56 = vld [vmem:[#allocation3 + $0x30] sm:$0xff]  ;;  %v71_v57 = vld [vmem:[#allocation3 + $0x38] sm:$0xff] }
  0x44   :  { %1341 = vmatprep.subr.bf16.mxu0 %v1340_v22  ;;  %1368 = vmatpush3.bf16.msra.mxu1 %v1767_v24  ;;  %v1833_v58 = vld [vmem:[%s1961_s3] ss:$0 sm:$0xff]  ;;  %s1679_s3 = smov [#allocation9]  }
  0x45   :  { %1369 = vmatprep.subr.bf16.mxu1 %v1676_v0  ;;  %s830_s26 = sshll.u32 %s1679_s3, 4  ;;  %s831_s26 = int_to_ptr.vmem [resolvable:$true] %s830_s26 }
  0x46   :  { %s1643_s29 = scalar_lea.vmem %s831_s26, 1024  ;;  %p1648_p11 = scmp.lt.s32.totalorder %s831_s26, %s831_s26 }
  0x47   :  { %1343 = vmatpush3.bf16.msra.mxu0 %v1340_v22  ;;  %p1644_p10 = scmp.ne.s32.totalorder %s831_s26, %s1643_s29  ;;  %p1649_p12 = scmp.lt.s32.totalorder %s1643_s29, %s1643_s29 }
  0x48   :  { %1345 = vmatprep.subr.bf16.mxu0 %v1344_v28  ;;  %1371 = vmatpush3.bf16.msra.mxu1 %v1771_v30 }
  0x49   :  { %1372 = vmatprep.subr.bf16.mxu1 %v1676_v0  ;;  %p1650_p13 = por %p1649_p12, %p1648_p11 }
  0x4b   :  { %1347 = vmatpush3.bf16.msra.mxu0 %v1344_v28  ;;  %p1651_p0 = pnand %p1650_p13, %p1644_p10 }
  0x4c   :  { %1349 = vmatprep.subr.bf16.mxu0 %v1348_v34  ;;  %1374 = vmatpush3.bf16.msra.mxu1 %v1775_v36 }
  0x4d   :  { %1375 = vmatprep.subr.bf16.mxu1 %v1676_v0 }
  0x4f   :  { %1351 = vmatpush3.bf16.msra.mxu0 %v1348_v34 }
  0x50   :  { %1353 = vmatprep.subr.bf16.mxu0 %v1352_v40  ;;  %1377 = vmatpush3.bf16.msra.mxu1 %v1779_v42 }
  0x51   :  { %1378 = vmatprep.subr.bf16.mxu1 %v1676_v0 }
  0x53   :  { %1355 = vmatpush3.bf16.msra.mxu0 %v1352_v40 }
  0x54   :  { %1357 = vmatprep.subr.bf16.mxu0 %v1356_v46  ;;  %1380 = vmatpush3.bf16.msra.mxu1 %v1783_v47 }
  0x55   :  { %1381 = vmatprep.subr.bf16.mxu1 %v1676_v0 }
  0x57   :  { %1359 = vmatpush3.bf16.msra.mxu0 %v1356_v46 }
  0x58   :  { %1383 = vmatpush3.bf16.msra.mxu1 %v1787_v50  ;;  %1384 = vmatprep.subr.bf16.mxu0 %v1676_v0 }
  0x59   :  { %1408 = vmatprep.subr.bf16.mxu1 %v1676_v0 }
  0x5a   :  { %1037 = vmatmul.mubr.f32.vlgmr.msra.gmra.mrb[0].mxu0 %v65_v51 }
  0x5b   :  { %1081 = vmatmul.mubr.f32.vlgmr.msra.gmra.mrb[0].mxu1 %v1678_v1  ;;  %1386 = vmatpush3.bf16.msra.mxu0 %v1760_v12 }
  0x5c   :  { %1387 = vmatprep.subr.bf16.mxu0 %v1676_v0  ;;  %1410 = vmatpush3.bf16.msra.mxu1 %v1760_v12 }
  0x5d   :  { %1411 = vmatprep.subr.bf16.mxu1 %v1676_v0  ;;  %1150 = vmatprep.mubr.msk.f32.mxu1 %vm1677_vm0, %v1678_v1 }
  0x5e   :  { %1039 = vmatprep.mubr.f32.mxu0 %v66_v52 }
  0x5f   :  { %1389 = vmatpush3.bf16.msra.mxu0 %v1763_v17 }
  0x60   :  { %1390 = vmatprep.subr.bf16.mxu0 %v1676_v0  ;;  %1413 = vmatpush3.bf16.msra.mxu1 %v1763_v17 }
  0x61   :  { %1414 = vmatprep.subr.bf16.mxu1 %v1676_v0  ;;  %1040 = vmatmul.mubr.f32.gmra.mrb[2].mxu0 %v67_v53 }
  0x62   :  { %1042 = vmatprep.mubr.f32.mxu0 %v68_v54 }
  0x63   :  { %1392 = vmatpush3.bf16.msra.mxu0 %v1767_v24 }
  0x64   :  { %1393 = vmatprep.subr.bf16.mxu0 %v1676_v0  ;;  %1416 = vmatpush3.bf16.msra.mxu1 %v1767_v24 }
  0x65   :  { %1417 = vmatprep.subr.bf16.mxu1 %v1676_v0  ;;  %1043 = vmatmul.mubr.f32.gmra.mrb[4].mxu0 %v69_v55 }
  0x66   :  { %1045 = vmatprep.mubr.f32.mxu0 %v70_v56 }
  0x67   :  { %1395 = vmatpush3.bf16.msra.mxu0 %v1771_v30 }
  0x68   :  { %1396 = vmatprep.subr.bf16.mxu0 %v1676_v0  ;;  %1419 = vmatpush3.bf16.msra.mxu1 %v1771_v30 }
  0x69   :  { %1420 = vmatprep.subr.bf16.mxu1 %v1676_v0  ;;  %1046 = vmatmul.mubr.f32.gmra.mrb[6].mxu0 %v71_v57 }
  0x6a   :  { %1115 = vmatprep.mubr.msk.f32.mxu0 %vm1677_vm0, %v1678_v1 }
  0x6b   :  { %1398 = vmatpush3.bf16.msra.mxu0 %v1775_v36 }
  0x6c   :  { %1399 = vmatprep.subr.bf16.mxu0 %v1676_v0  ;;  %1422 = vmatpush3.bf16.msra.mxu1 %v1775_v36 }
  0x6d   :  { %1423 = vmatprep.subr.bf16.mxu1 %v1676_v0 }
  0x6f   :  { %1401 = vmatpush3.bf16.msra.mxu0 %v1779_v42 }
  0x70   :  { %1402 = vmatprep.subr.bf16.mxu0 %v1676_v0  ;;  %1425 = vmatpush3.bf16.msra.mxu1 %v1779_v42 }
  0x71   :  { %1426 = vmatprep.subr.bf16.mxu1 %v1676_v0 }
  0x73   :  { %1404 = vmatpush3.bf16.msra.mxu0 %v1783_v47 }
  0x74   :  { %1405 = vmatprep.subr.bf16.mxu0 %v1676_v0  ;;  %1428 = vmatpush3.bf16.msra.mxu1 %v1783_v47 }
  0x75   :  { %1429 = vmatprep.subr.bf16.mxu1 %v1676_v0 }
  0x77   :  { %1407 = vmatpush3.bf16.msra.mxu0 %v1787_v50 }
  0x78   :  { %1431 = vmatpush3.bf16.msra.mxu1 %v1787_v50  ;;  %1432 = vmatprep.subr.bf16.mxu0 %v1676_v0 }
  0x79   :  { %1456 = vmatprep.subr.bf16.mxu1 %v1676_v0 }
 0x12d   :  { %v1038_v59 = vpop.f32.mrb[0].mxu0 }
 0x12e   :  { %v161_v60 = vpop.f32.mrb[1].mxu0  ;;  %v292_v61 = vpop.f32.mrb[0].mxu1  ;;  %v167_v10 = vadd.f32 %v1038_v59, %v1833_v58 }
 0x12f   :  { %v162_v62 = vadd.f32 %v1833_v58, %v161_v60  ;;  %v1082_v63 = vpop.f32.mrb[1].mxu1 }
 0x131   :  { %v296_v2 = vadd.f32 %v292_v61, %v162_v62 }
 0x133   :  { %1561 = vtanh.f32 %v296_v2 }
 0x134   :  { %v1041_v4 = vpop.f32.mrb[2].mxu0 }
 0x135   :  { %v171_v5 = vpop.f32.mrb[3].mxu0  ;;  %v177_v22 = vadd.f32 %v1041_v4, %v1833_v58 }
 0x136   :  { %v172_v16 = vadd.f32 %v1833_v58, %v171_v5 }
 0x138   :  { %v1854_v6 = vpop.f32.mrb[4].mxu0 }
 0x139   :  { %v1856_v7 = vpop.f32.mrb[5].mxu0 }
 0x13a   :  { %v182_v28 = vadd.f32 %v1833_v58, %v1856_v7 }
 0x13c   :  { %v1858_v8 = vpop.f32.mrb[6].mxu0 }
 0x13d   :  { %v1562_v3 = vpop.eup %1561  ;;  %v1860_v9 = vpop.f32.mrb[7].mxu0  ;;  %v197_v38 = vadd.f32 %v1858_v8, %v1833_v58 }
 0x13e   :  { %298 = vst [vmem:[#allocation9] sm:$0xff] %v1562_v3  ;;  %1116 = vmatmul.mubr.f32.vlgmr.msra.gmra.mrb[8].mxu0 %v1562_v3  ;;  %v192_v34 = vadd.f32 %v1833_v58, %v1860_v9 }
 0x13f   :  { %1434 = vmatpush3.bf16.msra.mxu0 %v1760_v12  ;;  %1185 = vmatprep.mubr.msk.f32.mxu0 %vm1677_vm0, %v1678_v1 }
 0x140   :  { %1435 = vmatprep.subr.bf16.mxu0 %v1676_v0 }
 0x143   :  { %1437 = vmatpush3.bf16.msra.mxu0 %v1763_v17 }
 0x144   :  { %1438 = vmatprep.subr.bf16.mxu0 %v1676_v0 }
 0x147   :  { %1440 = vmatpush3.bf16.msra.mxu0 %v1767_v24 }
 0x148   :  { %1441 = vmatprep.subr.bf16.mxu0 %v1676_v0 }
 0x14b   :  { %1443 = vmatpush3.bf16.msra.mxu0 %v1771_v30 }
 0x14c   :  { %1444 = vmatprep.subr.bf16.mxu0 %v1676_v0 }
 0x14f   :  { %1446 = vmatpush3.bf16.msra.mxu0 %v1775_v36 }
 0x150   :  { %1447 = vmatprep.subr.bf16.mxu0 %v1676_v0 }
 0x153   :  { %1449 = vmatpush3.bf16.msra.mxu0 %v1779_v42 }
 0x154   :  { %1450 = vmatprep.subr.bf16.mxu0 %v1676_v0 }
 0x157   :  { %1452 = vmatpush3.bf16.msra.mxu0 %v1783_v47 }
 0x158   :  { %1453 = vmatprep.subr.bf16.mxu0 %v1676_v0 }
 0x15b   :  { %1455 = vmatpush3.bf16.msra.mxu0 %v1787_v50 }
 0x15c   :  { %1480 = vmatprep.subr.bf16.mxu0 %v1676_v0 }
 0x211   :  { %v367_v11 = vpop.f32.mrb[8].mxu0 }
 0x212   :  { %v371_v13 = vadd.f32 %v367_v11, %v167_v10  ;;  %v1117_v14 = vpop.f32.mrb[9].mxu0 }
 0x214   :  { %1563 = vtanh.f32 %v371_v13 }
 0x21e   :  { %v1564_v15 = vpop.eup %1563 }
 0x21f   :  { %373 = vst [vmem:[#allocation9 + $0x8] sm:$0xff] %v1564_v15  ;;  %1151 = vmatmul.mubr.f32.vlgmr.msra.gmra.mrb[2].mxu1 %v1564_v15 }
 0x220   :  { %1458 = vmatpush3.bf16.msra.mxu1 %v1760_v12  ;;  %1220 = vmatprep.mubr.msk.f32.mxu1 %vm1677_vm0, %v1678_v1 }
 0x221   :  { %1459 = vmatprep.subr.bf16.mxu1 %v1676_v0 }
 0x224   :  { %1461 = vmatpush3.bf16.msra.mxu1 %v1763_v17 }
 0x225   :  { %1462 = vmatprep.subr.bf16.mxu1 %v1676_v0 }
 0x228   :  { %1464 = vmatpush3.bf16.msra.mxu1 %v1767_v24 }
 0x229   :  { %1465 = vmatprep.subr.bf16.mxu1 %v1676_v0 }
 0x22c   :  { %1467 = vmatpush3.bf16.msra.mxu1 %v1771_v30 }
 0x22d   :  { %1468 = vmatprep.subr.bf16.mxu1 %v1676_v0 }
 0x230   :  { %1470 = vmatpush3.bf16.msra.mxu1 %v1775_v36 }
 0x231   :  { %1471 = vmatprep.subr.bf16.mxu1 %v1676_v0 }
 0x234   :  { %1473 = vmatpush3.bf16.msra.mxu1 %v1779_v42 }
 0x235   :  { %1474 = vmatprep.subr.bf16.mxu1 %v1676_v0 }
 0x238   :  { %1476 = vmatpush3.bf16.msra.mxu1 %v1783_v47 }
 0x239   :  { %1477 = vmatprep.subr.bf16.mxu1 %v1676_v0 }
 0x23c   :  { %1479 = vmatpush3.bf16.msra.mxu1 %v1787_v50 }
 0x23d   :  { %1504 = vmatprep.subr.bf16.mxu1 %v1676_v0 }
 0x2f2   :  { %v442_v18 = vpop.f32.mrb[2].mxu1 }
 0x2f3   :  { %v446_v19 = vadd.f32 %v442_v18, %v172_v16  ;;  %v1152_v20 = vpop.f32.mrb[3].mxu1 }
 0x2f5   :  { %1565 = vtanh.f32 %v446_v19 }
 0x2ff   :  { %v1566_v21 = vpop.eup %1565 }
 0x300   :  { %448 = vst [vmem:[#allocation9 + $0x10] sm:$0xff] %v1566_v21  ;;  %1186 = vmatmul.mubr.f32.vlgmr.msra.gmra.mrb[10].mxu0 %v1566_v21 }
 0x301   :  { %1482 = vmatpush3.bf16.msra.mxu0 %v1760_v12  ;;  %1255 = vmatprep.mubr.msk.f32.mxu0 %vm1677_vm0, %v1678_v1 }
 0x302   :  { %1483 = vmatprep.subr.bf16.mxu0 %v1676_v0 }
 0x305   :  { %1485 = vmatpush3.bf16.msra.mxu0 %v1763_v17 }
 0x306   :  { %1486 = vmatprep.subr.bf16.mxu0 %v1676_v0 }
 0x309   :  { %1488 = vmatpush3.bf16.msra.mxu0 %v1767_v24 }
 0x30a   :  { %1489 = vmatprep.subr.bf16.mxu0 %v1676_v0 }
 0x30d   :  { %1491 = vmatpush3.bf16.msra.mxu0 %v1771_v30 }
 0x30e   :  { %1492 = vmatprep.subr.bf16.mxu0 %v1676_v0 }
 0x311   :  { %1494 = vmatpush3.bf16.msra.mxu0 %v1775_v36 }
 0x312   :  { %1495 = vmatprep.subr.bf16.mxu0 %v1676_v0 }
 0x315   :  { %1497 = vmatpush3.bf16.msra.mxu0 %v1779_v42 }
 0x316   :  { %1498 = vmatprep.subr.bf16.mxu0 %v1676_v0 }
 0x319   :  { %1500 = vmatpush3.bf16.msra.mxu0 %v1783_v47 }
 0x31a   :  { %1501 = vmatprep.subr.bf16.mxu0 %v1676_v0 }
 0x31d   :  { %1503 = vmatpush3.bf16.msra.mxu0 %v1787_v50 }
 0x31e   :  { %1528 = vmatprep.subr.bf16.mxu0 %v1676_v0 }
 0x3d3   :  { %v517_v23 = vpop.f32.mrb[10].mxu0 }
 0x3d4   :  { %v521_v25 = vadd.f32 %v517_v23, %v177_v22  ;;  %v1187_v26 = vpop.f32.mrb[11].mxu0 }
 0x3d6   :  { %1567 = vtanh.f32 %v521_v25 }
 0x3e0   :  { %v1568_v27 = vpop.eup %1567 }
 0x3e1   :  { %523 = vst [vmem:[#allocation9 + $0x18] sm:$0xff] %v1568_v27  ;;  %1221 = vmatmul.mubr.f32.vlgmr.msra.gmra.mrb[4].mxu1 %v1568_v27 }
 0x3e2   :  { %1506 = vmatpush3.bf16.msra.mxu1 %v1760_v12  ;;  %1290 = vmatprep.mubr.msk.f32.mxu1 %vm1677_vm0, %v1678_v1 }
 0x3e3   :  { %1507 = vmatprep.subr.bf16.mxu1 %v1676_v0 }
 0x3e6   :  { %1509 = vmatpush3.bf16.msra.mxu1 %v1763_v17 }
 0x3e7   :  { %1510 = vmatprep.subr.bf16.mxu1 %v1676_v0 }
 0x3ea   :  { %1512 = vmatpush3.bf16.msra.mxu1 %v1767_v24 }
 0x3eb   :  { %1513 = vmatprep.subr.bf16.mxu1 %v1676_v0 }
 0x3ee   :  { %1515 = vmatpush3.bf16.msra.mxu1 %v1771_v30 }
 0x3ef   :  { %1516 = vmatprep.subr.bf16.mxu1 %v1676_v0 }
 0x3f2   :  { %1518 = vmatpush3.bf16.msra.mxu1 %v1775_v36 }
 0x3f3   :  { %1519 = vmatprep.subr.bf16.mxu1 %v1676_v0 }
 0x3f6   :  { %1521 = vmatpush3.bf16.msra.mxu1 %v1779_v42 }
 0x3f7   :  { %1522 = vmatprep.subr.bf16.mxu1 %v1676_v0 }
 0x3fa   :  { %1524 = vmatpush3.bf16.msra.mxu1 %v1783_v47 }
 0x3fb   :  { %1525 = vmatprep.subr.bf16.mxu1 %v1676_v0 }
 0x3fe   :  { %1527 = vmatpush3.bf16.msra.mxu1 %v1787_v50 }
 0x4b4   :  { %v592_v29 = vpop.f32.mrb[4].mxu1 }
 0x4b5   :  { %v596_v31 = vadd.f32 %v592_v29, %v182_v28  ;;  %v1222_v32 = vpop.f32.mrb[5].mxu1 }
 0x4b7   :  { %1569 = vtanh.f32 %v596_v31 }
 0x4c1   :  { %v1570_v33 = vpop.eup %1569 }
 0x4c2   :  { %598 = vst [vmem:[#allocation9 + $0x20] sm:$0xff] %v1570_v33  ;;  %1256 = vmatmul.mubr.f32.vlgmr.msra.gmra.mrb[12].mxu0 %v1570_v33 }
 0x4c3   :  { %1530 = vmatpush3.bf16.msra.mxu0 %v1760_v12  ;;  %1325 = vmatprep.mubr.msk.f32.mxu0 %vm1677_vm0, %v1678_v1  ;;  %v187_v1 = vadd.f32 %v1854_v6, %v1833_v58 }
 0x4c4   :  { %1531 = vmatprep.subr.bf16.mxu0 %v1676_v0 }
 0x4c7   :  { %1533 = vmatpush3.bf16.msra.mxu0 %v1763_v17 }
 0x4c8   :  { %1534 = vmatprep.subr.bf16.mxu0 %v1676_v0 }
 0x4cb   :  { %1536 = vmatpush3.bf16.msra.mxu0 %v1767_v24 }
 0x4cc   :  { %1537 = vmatprep.subr.bf16.mxu0 %v1676_v0 }
 0x4cf   :  { %1539 = vmatpush3.bf16.msra.mxu0 %v1771_v30 }
 0x4d0   :  { %1540 = vmatprep.subr.bf16.mxu0 %v1676_v0 }
 0x4d3   :  { %1542 = vmatpush3.bf16.msra.mxu0 %v1775_v36 }
 0x4d4   :  { %1543 = vmatprep.subr.bf16.mxu0 %v1676_v0 }
 0x4d7   :  { %1545 = vmatpush3.bf16.msra.mxu0 %v1779_v42 }
 0x4d8   :  { %1546 = vmatprep.subr.bf16.mxu0 %v1676_v0 }
 0x4db   :  { %1548 = vmatpush3.bf16.msra.mxu0 %v1783_v47 }
 0x4dc   :  { %1549 = vmatprep.subr.bf16.mxu0 %v1676_v0 }
 0x4df   :  { %1551 = vmatpush3.bf16.msra.mxu0 %v1787_v50 }
 0x595   :  { %v667_v12 = vpop.f32.mrb[12].mxu0 }
 0x596   :  { %v671_v17 = vadd.f32 %v667_v12, %v187_v1  ;;  %v1257_v24 = vpop.f32.mrb[13].mxu0 }
 0x598   :  { %1571 = vtanh.f32 %v671_v17 }
 0x5a2   :  { %v1572_v30 = vpop.eup %1571 }
 0x5a3   :  { %673 = vst [vmem:[#allocation9 + $0x28] sm:$0xff] %v1572_v30  ;;  %1291 = vmatmul.mubr.f32.vlgmr.msra.gmra.mrb[6].mxu1 %v1572_v30 }
 0x676   :  { %v742_v35 = vpop.f32.mrb[6].mxu1 }
 0x677   :  { %v746_v36 = vadd.f32 %v742_v35, %v192_v34  ;;  %v1292_v37 = vpop.f32.mrb[7].mxu1 }
 0x679   :  { %1573 = vtanh.f32 %v746_v36 }
 0x683   :  { %v1574_v0 = vpop.eup %1573 }
 0x684   :  { %748 = vst [vmem:[#allocation9 + $0x30] sm:$0xff] %v1574_v0  ;;  %1326 = vmatmul.mubr.f32.vlgmr.msra.gmra.mrb[14].mxu0 %v1574_v0 }
 0x757   :  { %v817_v39 = vpop.f32.mrb[14].mxu0 }
 0x758   :  { %v821_v40 = vadd.f32 %v817_v39, %v197_v38  ;;  %v1327_v41 = vpop.f32.mrb[15].mxu0 }
 0x75a   :  { %1575 = vtanh.f32 %v821_v40 }
 0x764   :  { %v1576_v42 = vpop.eup %1575 }
 0x765   :  { %823 = vst [vmem:[#allocation9 + $0x38] sm:$0xff] %v1576_v42 }
 0x766   :  { %1654 = shalt.err (!%p1651_p0)
}
 0x767   :  { %s1655_s6 = scalar_lea.hbm %s1962_s4, 1024 }
 0x768   :  { %p1656_p1 = scmp.ne.s32.totalorder %s1962_s4, %s1655_s6  ;;  %p1659_p2 = scmp.lt.u32.totalorder %s1655_s6, %s1962_s4 }
 0x76a   :  { %p1661_p3 = pnand %p1659_p2, %p1656_p1 }
 0x76c   :  { %1664 = shalt.err (!%p1661_p3)
}
 0x76d   :  { %836 = dma.vmem_to_hbm [thread:$0]  %s831_s26, 1024, %s1962_s4, [#allocation5], %s1673_s27, %s1673_s27, %s1674_s28  }
 0x76e   :  { %1669 = dma.done.wait [#allocation5], 1024  }
 0x76f   :  { %1670 = vsyncadd [#allocation5], 4294966272 }
 0x770   :  { %840 = vsyncpa [#allocation4], 1 }
 0x771   :  { %841 = vsyncpa [#allocation7], 1 }
 0x772   :  { %842 = vsyncpa [#allocation5], 1 }

</bundles_post_ra>
